<compile_context>
chip_gen: v7x
topology: tpu7x:2x2x1
jax: 0.10.0
libtpu: 0.0.40
codegen_flags: <defaults>
</compile_context>

<pallas_src>
import functools

import jax
import jax.numpy as jnp
from jax.experimental import pallas as pl
from jax.experimental.pallas import tpu as pltpu

NEG_SLOPE = 0.01  # PyTorch nn.LeakyReLU default negative_slope


def _round_up(x, m):
    return ((x + m - 1) // m) * m


def _leaky_relu(y):
    return jnp.where(y >= 0, y, NEG_SLOPE * y)


def wide_kernel_multi_k(x_ref, w_ref, b_ref, o_ref, acc_ref):
    """K-tiled path: accumulate in f32 scratch, epilogue on last K step."""
    k = pl.program_id(2)

    @pl.when(k == 0)
    def _():
        acc_ref[...] = jnp.zeros_like(acc_ref)

    # MXU matmul, f32 accumulation in VMEM scratch.
    acc_ref[...] += jnp.dot(
        x_ref[...], w_ref[...], preferred_element_type=jnp.float32
    )

    # Bias + LeakyReLU epilogue and the single HBM writeback on the last step.
    @pl.when(k == pl.num_programs(2) - 1)
    def _():
        y = acc_ref[...] + b_ref[...]          # [TM, TN] + [1, TN], f32
        o_ref[...] = _leaky_relu(y).astype(o_ref.dtype)


def wide_kernel_single_k(x_ref, w_ref, b_ref, o_ref):
    """Fast path when the whole reduction fits in one K tile: no scratch."""
    y = jnp.dot(x_ref[...], w_ref[...], preferred_element_type=jnp.float32)
    y = y + b_ref[...]
    o_ref[...] = _leaky_relu(y).astype(o_ref.dtype)


@functools.partial(jax.jit, static_argnames=("tm", "tn", "tk", "compute_dtype"))
def wide_model(x, w, b, *, tm=256, tn=256, tk=512, compute_dtype=None):
    """x: [B, Din], w: [Din, Dout], b: [Dout]  ->  [B, Dout] float32.

    compute_dtype: optional dtype (e.g. jnp.bfloat16) for the MXU operands;
    accumulation and the bias/LeakyReLU epilogue stay in float32.
    """
    B, Din = x.shape
    Dout = w.shape[1]

    # Shrink tiles for small problems while staying (8, 128) aligned and
    # lane-dense.
    tm = min(tm, _round_up(B, 8))
    tk = min(tk, _round_up(Din, 128))
    tn = min(tn, _round_up(Dout, 128))

    Bp = _round_up(B, tm)
    Kp = _round_up(Din, tk)
    Np = _round_up(Dout, tn)

    if compute_dtype is not None:
        x = x.astype(compute_dtype)
        w = w.astype(compute_dtype)

    # Zero-pad to tile multiples only when needed (padded K contributes 0 to
    # the dot; padded rows/cols are sliced away below).
    if (Bp, Kp) != (B, Din):
        x = jnp.pad(x, ((0, Bp - B), (0, Kp - Din)))
    if (Kp, Np) != (Din, Dout):
        w = jnp.pad(w, ((0, Kp - Din), (0, Np - Dout)))
    b2 = b.astype(jnp.float32)
    if Np != Dout:
        b2 = jnp.pad(b2, (0, Np - Dout))
    b2 = b2.reshape(1, Np)

    gm, gn, gk = Bp // tm, Np // tn, Kp // tk

    # VMEM budget: double-buffered x/W/output tiles + bias + f32 accumulator.
    itemsize = jnp.dtype(x.dtype).itemsize
    working = (
        2 * (tm * tk + tk * tn) * itemsize   # double-buffered x / W tiles
        + 2 * tn * 4                         # bias tile
        + 2 * tm * tn * 4                    # double-buffered output tile
        + tm * tn * 4                        # accumulator scratch
    )
    vmem_limit = int(min(max(2 * working, 16 << 20), 48 << 20))

    cost = pl.CostEstimate(
        flops=2 * Bp * Kp * Np + 3 * Bp * Np,
        transcendentals=0,
        bytes_accessed=(Bp * Kp + Kp * Np) * itemsize + Bp * Np * 4 + Np * 4,
    )

    if gk == 1:
        # Single-K fast path: 2D grid, no accumulator scratch, no pl.when.
        out = pl.pallas_call(
            wide_kernel_single_k,
            out_shape=jax.ShapeDtypeStruct((Bp, Np), jnp.float32),
            grid=(gm, gn),
            in_specs=[
                pl.BlockSpec((tm, tk), lambda i, j: (i, 0)),
                pl.BlockSpec((tk, tn), lambda i, j: (0, j)),
                pl.BlockSpec((1, tn), lambda i, j: (0, j)),
            ],
            out_specs=pl.BlockSpec((tm, tn), lambda i, j: (i, j)),
            compiler_params=pltpu.CompilerParams(
                dimension_semantics=("parallel", "parallel"),
                vmem_limit_bytes=vmem_limit,
            ),
            cost_estimate=cost,
        )(x, w, b2)
    else:
        out = pl.pallas_call(
            wide_kernel_multi_k,
            out_shape=jax.ShapeDtypeStruct((Bp, Np), jnp.float32),
            grid=(gm, gn, gk),
            in_specs=[
                pl.BlockSpec((tm, tk), lambda i, j, k: (i, k)),
                pl.BlockSpec((tk, tn), lambda i, j, k: (k, j)),
                pl.BlockSpec((1, tn), lambda i, j, k: (0, j)),  # bias: j only
            ],
            out_specs=pl.BlockSpec((tm, tn), lambda i, j, k: (i, j)),
            scratch_shapes=[pltpu.VMEM((tm, tn), jnp.float32)],
            compiler_params=pltpu.CompilerParams(
                dimension_semantics=("parallel", "parallel", "arbitrary"),
                vmem_limit_bytes=vmem_limit,
            ),
            cost_estimate=cost,
        )(x, w, b2)

    if (Bp, Np) != (B, Dout):
        out = out[:B, :Dout]
    return out


if __name__ == "__main__":
    key = jax.random.PRNGKey(0)
    kx, kw, kb = jax.random.split(key, 3)

    batch, input_dim, output_dim = 8, 64, 32

    x = jax.random.normal(kx, (batch, input_dim), dtype=jnp.float32)
    # Deterministic param init (Kaiming-uniform-ish bound like nn.Linear).
    bound = 1.0 / jnp.sqrt(input_dim)
    w = jax.random.uniform(kw, (input_dim, output_dim), dtype=jnp.float32,
                           minval=-bound, maxval=bound)
    b = jax.random.uniform(kb, (output_dim,), dtype=jnp.float32,
                           minval=-bound, maxval=bound)

    # Reference in plain JAX (Linear -> LeakyReLU; Dropout(p=0) is identity).
    ref = x @ w + b
    ref = jnp.where(ref >= 0, ref, NEG_SLOPE * ref)

    # f32 path: matches the PyTorch module's float32 forward.
    out = wide_model(x, w, b)
    jax.block_until_ready(out)
    assert out.shape == (batch, output_dim)
    assert jnp.allclose(out, ref, atol=1e-5, rtol=1e-5)

    # bf16 MXU-operand path (recommended on v6e/v7x); f32 accum + epilogue.
    out_bf16 = wide_model(x, w, b, compute_dtype=jnp.bfloat16)
    jax.block_until_ready(out_bf16)
    assert jnp.allclose(out_bf16, ref, atol=2e-2, rtol=2e-2)

    # Exercise the multi-K (3D-grid, accumulator) path with a larger K and
    # small forced tiles to cover the reduction loop + pl.when epilogue.
    kx2, kw2, kb2 = jax.random.split(jax.random.PRNGKey(1), 3)
    B2, Din2, Dout2 = 16, 512, 128
    x2 = jax.random.normal(kx2, (B2, Din2), dtype=jnp.float32)
    w2 = jax.random.normal(kw2, (Din2, Dout2), dtype=jnp.float32) * 0.02
    b2 = jax.random.normal(kb2, (Dout2,), dtype=jnp.float32) * 0.02
    ref2 = x2 @ w2 + b2
    ref2 = jnp.where(ref2 >= 0, ref2, NEG_SLOPE * ref2)
    out2 = wide_model(x2, w2, b2, tm=16, tn=128, tk=128)
    jax.block_until_ready(out2)
    assert jnp.allclose(out2, ref2, atol=1e-4, rtol=1e-4)

    print("KERNEL_OK")
</pallas_src>

<mosaic_0001>
module attributes {stable_mosaic.version = 11 : i64} {
  func.func @wide_kernel_single_k(%arg0: i32, %arg1: i32, %arg2: memref<8x128xf32, #tpu.memory_space<vmem>>, %arg3: memref<128x128xf32, #tpu.memory_space<vmem>>, %arg4: memref<1x128xf32, #tpu.memory_space<vmem>>, %arg5: memref<8x128xf32, #tpu.memory_space<vmem>>) attributes {dimension_semantics = [#tpu.dimension_semantics<parallel>, #tpu.dimension_semantics<parallel>], iteration_bounds = array<i64: 1, 1>, scalar_prefetch = 0 : i64, scratch_operands = 0 : i64, tpu.core_type = #tpu.core_type<tc>, window_params = [{transform_indices = @transform_0, window_bounds = array<i64: 8, 128>}, {transform_indices = @transform_1, window_bounds = array<i64: 128, 128>}, {transform_indices = @transform_2, window_bounds = array<i64: 1, 128>}, {transform_indices = @transform_3, window_bounds = array<i64: 8, 128>}]} {
    %c0 = arith.constant 0 : index
    %c0_0 = arith.constant 0 : index
    %0 = vector.load %arg2[%c0, %c0_0] : memref<8x128xf32, #tpu.memory_space<vmem>>, vector<8x128xf32>
    %c0_1 = arith.constant 0 : index
    %c0_2 = arith.constant 0 : index
    %1 = vector.load %arg3[%c0_1, %c0_2] : memref<128x128xf32, #tpu.memory_space<vmem>>, vector<128x128xf32>
    %cst = arith.constant dense<0.000000e+00> : vector<8x128xf32>
    %2 = tpu.matmul %0, %1, %cst {dimension_numbers = #tpu.dot_dimension_numbers<[1], [0], [0], [1], [0, 0, 1, 1], [], []>} : vector<8x128xf32>, vector<128x128xf32>, vector<8x128xf32> -> vector<8x128xf32>
    %c0_3 = arith.constant 0 : index
    %c0_4 = arith.constant 0 : index
    %3 = vector.load %arg4[%c0_3, %c0_4] : memref<1x128xf32, #tpu.memory_space<vmem>>, vector<1x128xf32>
    %4 = vector.broadcast %3 : vector<1x128xf32> to vector<8x128xf32>
    %5 = arith.addf %2, %4 : vector<8x128xf32>
    %cst_5 = arith.constant 0.000000e+00 : f32
    %6 = vector.broadcast %cst_5 : f32 to vector<8x128xf32>
    %7 = arith.cmpf oge, %5, %6 : vector<8x128xf32>
    %cst_6 = arith.constant 0.00999999977 : f32
    %8 = vector.broadcast %cst_6 : f32 to vector<8x128xf32>
    %9 = arith.mulf %8, %5 : vector<8x128xf32>
    %10 = arith.select %7, %5, %9 : vector<8x128xi1>, vector<8x128xf32>
    %c0_7 = arith.constant 0 : index
    %c0_8 = arith.constant 0 : index
    %11 = vector.load %arg5[%c0_7, %c0_8] : memref<8x128xf32, #tpu.memory_space<vmem>>, vector<8x128xf32>
    tpu.vector_store %arg5[%c0_7, %c0_8], %10 {strides = array<i32>} : memref<8x128xf32, #tpu.memory_space<vmem>>, vector<8x128xf32>,
    return
  }
  func.func @transform_0(%arg0: i32, %arg1: i32) -> (i32, i32) {
    %c0_i32 = arith.constant 0 : i32
    %c0_i32_0 = arith.constant 0 : i32
    return %arg0, %c0_i32 : i32, i32
  }
  func.func @transform_1(%arg0: i32, %arg1: i32) -> (i32, i32) {
    %c0_i32 = arith.constant 0 : i32
    %c0_i32_0 = arith.constant 0 : i32
    return %c0_i32, %arg1 : i32, i32
  }
  func.func @transform_2(%arg0: i32, %arg1: i32) -> (i32, i32) {
    %c0_i32 = arith.constant 0 : i32
    %c0_i32_0 = arith.constant 0 : i32
    return %c0_i32, %arg1 : i32, i32
  }
  func.func @transform_3(%arg0: i32, %arg1: i32) -> (i32, i32) {
    %c0_i32 = arith.constant 0 : i32
    return %arg0, %arg1 : i32, i32
  }
}

</mosaic_0001>

<bundles_post_ra>
// kernel: wide_model.1
= control target key start
LH: loop header
LB: loop body
LE: loop exit
PB: predicated region body
PF: predicated region fallthrough
CT: control target
= control target key end

     0   :  { %v232_v3 = vmov 0.0|0.0   ;;  %vm233_vm0 = vmmov 0   ;;  %v234_v6 = vmov 0.0   ;;  %s322_s0 = inlined_call_operand.vmem [shape: f32[8,128], index: 0, kind: input, shape index: {}]   ;;  %s323_s1 = inlined_call_operand.vmem [shape: f32[128,128], index: 1, kind: input, shape index: {}]   ;;  %s324_s2 = inlined_call_operand.vmem [shape: f32[1,128], index: 2, kind: input, shape index: {}]   ;;  %s325_s3 = inlined_call_operand.hbm [shape: f32[8,128], index: 3, kind: output, shape index: {}]  }
   0x1   :  { %v16_v0 = vld [vmem:[%s323_s1] sm:$0xff]  ;;  %v17_v1 = vld [vmem:[%s323_s1 + $0x8] sm:$0xff]  ;;  %v18_v2 = vld [vmem:[%s323_s1 + $0x10] sm:$0xff]  ;;  %180 = vmatprep.subr.bf16.mxu0 %v232_v3  ;;  %177 = vmatprep.mubr.msk.f32.mxu0 %vm233_vm0, %v234_v6 }
   0x2   :  { %v181_v4 = vpack.c.bf16 %v17_v1, %v16_v0  ;;  %v19_v5 = vld [vmem:[%s323_s1 + $0x18] sm:$0xff]  ;;  %v20_v8 = vld [vmem:[%s323_s1 + $0x20] sm:$0xff]  ;;  %v21_v9 = vld [vmem:[%s323_s1 + $0x28] sm:$0xff] }
   0x3   :  { %v184_v7 = vpack.c.bf16 %v19_v5, %v18_v2 }
   0x4   :  { %182 = vmatpush3.bf16.msra.mxu0 %v181_v4 }
   0x5   :  { %183 = vmatprep.subr.bf16.mxu0 %v232_v3 }
   0x6   :  { %8 = vsyncpa [#allocation3], 0  ;;  %v187_v10 = vpack.c.bf16 %v21_v9, %v20_v8  ;;  %v22_v11 = vld [vmem:[%s323_s1 + $0x30] sm:$0xff]  ;;  %v23_v12 = vld [vmem:[%s323_s1 + $0x38] sm:$0xff]  ;;  %s235_s21 = smov [#allocation2]  }
   0x7   :  { %v190_v13 = vpack.c.bf16 %v23_v12, %v22_v11  ;;  %v24_v14 = vld [vmem:[%s323_s1 + $0x40] sm:$0xff]  ;;  %v25_v15 = vld [vmem:[%s323_s1 + $0x48] sm:$0xff]  ;;  %v26_v17 = vld [vmem:[%s323_s1 + $0x50] sm:$0xff]  ;;  %s119_s22 = sshll.u32 %s235_s21, 4  ;;  %s120_s22 = int_to_ptr.vmem [resolvable:$true] %s119_s22 }
   0x8   :  { %185 = vmatpush3.bf16.msra.mxu0 %v184_v7  ;;  %v193_v16 = vpack.c.bf16 %v25_v15, %v24_v14  ;;  %v27_v18 = vld [vmem:[%s323_s1 + $0x58] sm:$0xff]  ;;  %v28_v20 = vld [vmem:[%s323_s1 + $0x60] sm:$0xff]  ;;  %v29_v21 = vld [vmem:[%s323_s1 + $0x68] sm:$0xff]  ;;  %p213_p1 = scmp.lt.s32.totalorder %s120_s22, %s120_s22 }
   0x9   :  { %186 = vmatprep.subr.bf16.mxu0 %v232_v3  ;;  %v196_v19 = vpack.c.bf16 %v27_v18, %v26_v17  ;;  %v199_v22 = vpack.c.bf16 %v29_v21, %v28_v20  ;;  %v30_v23 = vld [vmem:[%s323_s1 + $0x70] sm:$0xff]  ;;  %v31_v24 = vld [vmem:[%s323_s1 + $0x78] sm:$0xff]  ;;  %v15_v26 = vld [vmem:[%s322_s0] sm:$0xff]  ;;  %s208_s1 = scalar_lea.vmem %s120_s22, 128 }
   0xa   :  { %v202_v25 = vpack.c.bf16 %v31_v24, %v30_v23  ;;  %v127_v27 = vld [vmem:[%s324_s2] ss:$0 sm:$0xff]  ;;  %p209_p0 = scmp.ne.s32.totalorder %s120_s22, %s208_s1  ;;  %p214_p2 = scmp.lt.s32.totalorder %s208_s1, %s208_s1 }
   0xc   :  { %188 = vmatpush3.bf16.msra.mxu0 %v187_v10  ;;  %p215_p3 = por %p214_p2, %p213_p1 }
   0xd   :  { %189 = vmatprep.subr.bf16.mxu0 %v232_v3 }
   0xe   :  { %p216_p4 = pnand %p215_p3, %p209_p0 }
  0x10   :  { %191 = vmatpush3.bf16.msra.mxu0 %v190_v13 }
  0x11   :  { %192 = vmatprep.subr.bf16.mxu0 %v232_v3 }
  0x14   :  { %194 = vmatpush3.bf16.msra.mxu0 %v193_v16 }
  0x15   :  { %195 = vmatprep.subr.bf16.mxu0 %v232_v3 }
  0x18   :  { %197 = vmatpush3.bf16.msra.mxu0 %v196_v19 }
  0x19   :  { %198 = vmatprep.subr.bf16.mxu0 %v232_v3 }
  0x1c   :  { %200 = vmatpush3.bf16.msra.mxu0 %v199_v22 }
  0x1d   :  { %201 = vmatprep.subr.bf16.mxu0 %v232_v3 }
  0x20   :  { %203 = vmatpush3.bf16.msra.mxu0 %v202_v25 }
  0x23   :  { %178 = vmatmul.mubr.f32.vlgmr.msra.gmra.mrb[0].mxu0 %v15_v26 }
  0xf6   :  { %v105_v28 = vpop.f32.mrb[0].mxu0 }
  0xf7   :  { %v106_v29 = vadd.f32 %v127_v27, %v105_v28  ;;  %v179_v30 = vpop.f32.mrb[1].mxu0 }
  0xf9   :  { %v110_v31 = vmul.f32 0.01, %v106_v29  ;;  %vm109_vm1 = vcmp.ge.f32.partialorder %v106_v29, 0.0 }
  0xfb   :  { %v111_v32 = vsel %vm109_vm1, %v106_v29, %v110_v31 }
  0xfc   :  { %112 = vst [vmem:[#allocation2] sm:$0xff] %v111_v32 }
  0xfd   :  { %219 = shalt.err (!%p216_p4)
}
  0xfe   :  { %s220_s2 = scalar_lea.hbm %s325_s3, 128 }
  0xff   :  { %p221_p5 = scmp.ne.s32.totalorder %s325_s3, %s220_s2  ;;  %p224_p6 = scmp.lt.u32.totalorder %s220_s2, %s325_s3 }
 0x101   :  { %p226_p7 = pnand %p224_p6, %p221_p5 }
 0x103   :  { %229 = shalt.err (!%p226_p7)
}
 0x104   :  { %122 = dma.vmem_to_hbm [thread:$0]  %s120_s22, 128, %s325_s3, [#allocation3]  }
 0x105   :  { %230 = dma.done.wait [#allocation3], 128  }
 0x106   :  { %231 = vsyncadd [#allocation3], 4294967168 }
 0x107   :  { %126 = vsyncpa [#allocation3], 1 }

</bundles_post_ra>
